<compile_context>
chip_gen: v7x
topology: tpu7x:2x2x1
jax: 0.10.0
libtpu: 0.0.40
codegen_flags: <defaults>
</compile_context>

<pallas_src>
import functools

import jax
import jax.numpy as jnp
from jax import lax
from jax.experimental import pallas as pl
from jax.experimental.pallas import tpu as pltpu

_LANE = 128
_NEG_BIG = -1e30  # large finite negative: exp() underflows to 0, 0*(-1e30) stays finite


def _round_up(x, m):
    return (x + m - 1) // m * m


def _supcon_kernel(feat_ref, lab_col_ref, lab_row_ref, out_ref, *,
                   inv_temperature, batch_size, block_rows):
    """One anchor-row tile: rows [i*TM, (i+1)*TM) against all B_pad columns."""
    i = pl.program_id(0)

    # Anchor tile is sliced out of the (resident) padded feature block.
    start = pl.multiple_of(i * block_rows, block_rows)
    f_tile = feat_ref[pl.ds(start, block_rows), :]        # (TM, Dp) bf16
    f_all = feat_ref[...]                                 # (Bp, Dp) bf16

    # sim = (f_tile @ f_all.T) / temperature  -- bf16 MXU matmul, f32 accumulation.
    sim = lax.dot_general(
        f_tile, f_all, (((1,), (1,)), ((), ())),
        preferred_element_type=jnp.float32) * jnp.float32(inv_temperature)  # (TM, Bp)

    tm, bp = sim.shape
    col_ids = lax.broadcasted_iota(jnp.int32, (tm, bp), 1)
    row_ids = lax.broadcasted_iota(jnp.int32, (tm, bp), 0) + i * block_rows
    valid_col = col_ids < batch_size                      # exclude padded columns
    is_diag = col_ids == row_ids                          # self-contrast

    # Padded contrast columns behave as if absent.
    sim = jnp.where(valid_col, sim, jnp.float32(_NEG_BIG))

    # Row max over real columns (diagonal included, matching the reference).
    row_max = jnp.max(sim, axis=1, keepdims=True)         # (TM, 1)
    logits = sim - row_max

    # Fold the self-contrast exclusion into the logits: exp(-1e30) == 0, and
    # everywhere the fold changes values the positive mask is 0 anyway.
    logits = jnp.where(is_diag, jnp.float32(_NEG_BIG), logits)
    exp_logits = jnp.exp(logits)                          # 0 on diag / pad cols

    same_label = lab_col_ref[...] == lab_row_ref[...]     # (TM,1)==(1,Bp) -> (TM,Bp)
    pos_mask = jnp.where(
        same_label & valid_col & jnp.logical_not(is_diag),
        jnp.float32(1.0), jnp.float32(0.0))               # (TM, Bp)

    # Lane-axis reductions on the (otherwise idle) MXU via ones-matmuls.
    ones_col = jnp.ones((bp, 1), jnp.float32)
    denom = jnp.dot(exp_logits, ones_col,
                    preferred_element_type=jnp.float32) + jnp.float32(1e-8)   # (TM,1)
    pos_cnt = jnp.dot(pos_mask, ones_col,
                      preferred_element_type=jnp.float32)                     # (TM,1)
    pos_sum = jnp.dot(pos_mask * logits, ones_col,
                      preferred_element_type=jnp.float32)                     # (TM,1)

    # sum(mask * (logits - log(denom))) == pos_sum - pos_cnt * log(denom)
    mean_log_prob_pos = (pos_sum - pos_cnt * jnp.log(denom)) / (pos_cnt + jnp.float32(1e-8))
    out_ref[...] = -mean_log_prob_pos                     # per-row loss, (TM, 1)


def supcon_loss(features, labels, temperature=0.07, block_rows=128):
    """features: [B, D] float; labels: [B] int. Returns scalar float32 loss."""
    B, D = features.shape
    bp = _round_up(max(B, _LANE), _LANE)
    bp = _round_up(bp, block_rows)                 # block_rows divides bp
    dp = _round_up(D, _LANE)                       # zero-pad K; dot products unchanged

    feats = jnp.pad(features.astype(jnp.bfloat16), ((0, bp - B), (0, dp - D)))
    labs = jnp.pad(labels.astype(jnp.int32), (0, bp - B))
    lab_col = labs.reshape(bp, 1)
    lab_row = labs.reshape(1, bp)

    num_tiles = bp // block_rows

    # VMEM budget from the actual footprint: resident bf16 features, anchor
    # tile, plus ~10 live (TM, Bp) f32 intermediates; clamped for v7x (64 MiB).
    est = (2 * bp * dp * 2
           + 2 * block_rows * dp * 2
           + 10 * block_rows * bp * 4
           + (1 << 20))
    vmem_limit = int(min(max(2 * est, 32 * 1024 * 1024), 56 * 1024 * 1024))

    kernel = functools.partial(
        _supcon_kernel,
        inv_temperature=1.0 / temperature,
        batch_size=B,
        block_rows=block_rows)

    per_row = pl.pallas_call(
        kernel,
        out_shape=jax.ShapeDtypeStruct((bp, 1), jnp.float32),
        grid_spec=pltpu.PrefetchScalarGridSpec(
            num_scalar_prefetch=0,
            grid=(num_tiles,),
            in_specs=[
                pl.BlockSpec((bp, dp), lambda i: (0, 0)),          # features, resident
                pl.BlockSpec((block_rows, 1), lambda i: (i, 0)),   # labels (column, tiled)
                pl.BlockSpec((1, bp), lambda i: (0, 0)),           # labels (row, resident)
            ],
            out_specs=pl.BlockSpec((block_rows, 1), lambda i: (i, 0)),
        ),
        compiler_params=pltpu.CompilerParams(
            dimension_semantics=("parallel",),
            vmem_limit_bytes=vmem_limit),
    )(feats, lab_col, lab_row)

    # Drop padded rows, average over the TRUE batch size.
    return jnp.sum(per_row[:B, 0]) / B


def supcon_loss_ref(features, labels, temperature=0.07):
    """Pure-JAX reference mirroring the PyTorch forward pass."""
    f = features.astype(jnp.float32)
    B = f.shape[0]
    mask = (labels[:, None] == labels[None, :]).astype(jnp.float32)
    sim = (f @ f.T) / temperature
    logits = sim - jnp.max(sim, axis=1, keepdims=True)
    logits_mask = 1.0 - jnp.eye(B, dtype=jnp.float32)
    mask = mask * logits_mask
    exp_logits = jnp.exp(logits) * logits_mask
    log_prob = logits - jnp.log(jnp.sum(exp_logits, axis=1, keepdims=True) + 1e-8)
    mean_log_prob_pos = jnp.sum(mask * log_prob, axis=1) / (jnp.sum(mask, axis=1) + 1e-8)
    return jnp.mean(-mean_log_prob_pos)


def _check(features, labels, temperature=0.07):
    loss = jax.block_until_ready(supcon_loss(features, labels, temperature))
    # Tight check vs. the reference evaluated on bf16-rounded inputs
    # (isolates kernel math from the intentional bf16 feature cast).
    f_bf16 = features.astype(jnp.bfloat16).astype(jnp.float32)
    ref_tight = supcon_loss_ref(f_bf16, labels, temperature)
    assert jnp.allclose(loss, ref_tight, rtol=5e-3, atol=5e-3), (loss, ref_tight)
    # Loose check vs. the full-f32 reference (bf16 feature quantization).
    ref_f32 = supcon_loss_ref(features, labels, temperature)
    assert jnp.allclose(loss, ref_f32, rtol=5e-2, atol=5e-2), (loss, ref_f32)
    return loss


if __name__ == "__main__":
    key = jax.random.PRNGKey(0)

    # Small shape implied by the module: batch=8 anchors, proj_dim=32.
    kf, kl, kf2, kl2 = jax.random.split(key, 4)
    B, D = 8, 32
    features = jax.random.normal(kf, (B, D), dtype=jnp.float32)
    features = features / jnp.linalg.norm(features, axis=1, keepdims=True)
    labels = jax.random.randint(kl, (B,), 0, 3, dtype=jnp.int32)
    _check(features, labels, temperature=0.07)

    # Second shape exercising batch/proj padding and a multi-tile grid.
    B2, D2 = 200, 48
    features2 = jax.random.normal(kf2, (B2, D2), dtype=jnp.float32)
    features2 = features2 / jnp.linalg.norm(features2, axis=1, keepdims=True)
    labels2 = jax.random.randint(kl2, (B2,), 0, 6, dtype=jnp.int32)
    _check(features2, labels2, temperature=0.07)

    print("KERNEL_OK")
</pallas_src>

<mosaic_0001>
module attributes {stable_mosaic.version = 11 : i64} {
  func.func @_supcon_kernel(%arg0: i32, %arg1: memref<128x128xbf16, #tpu.memory_space<vmem>>, %arg2: memref<128x1xi32, #tpu.memory_space<vmem>>, %arg3: memref<1x128xi32, #tpu.memory_space<vmem>>, %arg4: memref<128x1xf32, #tpu.memory_space<vmem>>) attributes {dimension_semantics = [#tpu.dimension_semantics<parallel>], iteration_bounds = array<i64: 1>, scalar_prefetch = 0 : i64, scratch_operands = 0 : i64, tpu.core_type = #tpu.core_type<tc>, window_params = [{pipeline_mode = #tpu.pipeline_mode<synchronous>, transform_indices = @transform_0, window_bounds = array<i64: 128, 128>}, {transform_indices = @transform_1, window_bounds = array<i64: 128, 1>}, {pipeline_mode = #tpu.pipeline_mode<synchronous>, transform_indices = @transform_2, window_bounds = array<i64: 1, 128>}, {transform_indices = @transform_3, window_bounds = array<i64: 128, 1>}]} {
    %c128_i32 = arith.constant 128 : i32
    %0 = arith.muli %arg0, %c128_i32 : i32
    %1 = tpu.assume_multiple %0, 128 : i32
    %2 = arith.index_cast %1 : i32 to index
    %c0 = arith.constant 0 : index
    %3 = vector.load %arg1[%2, %c0] : memref<128x128xbf16, #tpu.memory_space<vmem>>, vector<128x128xbf16>
    %c0_0 = arith.constant 0 : index
    %c0_1 = arith.constant 0 : index
    %4 = vector.load %arg1[%c0_0, %c0_1] : memref<128x128xbf16, #tpu.memory_space<vmem>>, vector<128x128xbf16>
    %cst = arith.constant dense<0.000000e+00> : vector<128x128xf32>
    %5 = tpu.matmul %3, %4, %cst {dimension_numbers = #tpu.dot_dimension_numbers<[1], [1], [0], [0], [0, 0, 1, 0], [], []>} : vector<128x128xbf16>, vector<128x128xbf16>, vector<128x128xf32> -> vector<128x128xf32>
    %cst_2 = arith.constant 14.2857141 : f32
    %6 = vector.broadcast %cst_2 : f32 to vector<128x128xf32>
    %7 = arith.mulf %5, %6 : vector<128x128xf32>
    %8 = tpu.iota {dimensions = array<i32: 1>} : vector<128x128xi32>
    %9 = tpu.iota {dimensions = array<i32: 0>} : vector<128x128xi32>
    %c128_i32_3 = arith.constant 128 : i32
    %10 = arith.muli %arg0, %c128_i32_3 : i32
    %11 = vector.broadcast %10 : i32 to vector<128x128xi32>
    %12 = arith.addi %9, %11 : vector<128x128xi32>
    %c8_i32 = arith.constant 8 : i32
    %13 = vector.broadcast %c8_i32 : i32 to vector<128x128xi32>
    %14 = arith.cmpi slt, %8, %13 : vector<128x128xi32>
    %15 = arith.cmpi eq, %8, %12 : vector<128x128xi32>
    %cst_4 = arith.constant -1.000000e+30 : f32
    %16 = vector.broadcast %cst_4 : f32 to vector<128x128xf32>
    %17 = arith.select %14, %7, %16 : vector<128x128xi1>, vector<128x128xf32>
    %cst_5 = arith.constant dense<0xFF800000> : vector<128xf32>
    %18 = vector.multi_reduction <maximumf>, %17, %cst_5 [1] : vector<128x128xf32> to vector<128xf32>
    %19 = vector.shape_cast %18 : vector<128xf32> to vector<128x1xf32>
    %20 = vector.broadcast %19 : vector<128x1xf32> to vector<128x128xf32>
    %21 = arith.subf %17, %20 : vector<128x128xf32>
    %cst_6 = arith.constant -1.000000e+30 : f32
    %22 = vector.broadcast %cst_6 : f32 to vector<128x128xf32>
    %23 = arith.select %15, %22, %21 : vector<128x128xi1>, vector<128x128xf32>
    %24 = math.exp %23 : vector<128x128xf32>
    %c0_7 = arith.constant 0 : index
    %c0_8 = arith.constant 0 : index
    %25 = vector.load %arg2[%c0_7, %c0_8] : memref<128x1xi32, #tpu.memory_space<vmem>>, vector<128x1xi32>
    %c0_9 = arith.constant 0 : index
    %c0_10 = arith.constant 0 : index
    %26 = vector.load %arg3[%c0_9, %c0_10] : memref<1x128xi32, #tpu.memory_space<vmem>>, vector<1x128xi32>
    %27 = vector.broadcast %25 : vector<128x1xi32> to vector<128x128xi32>
    %28 = vector.broadcast %26 : vector<1x128xi32> to vector<128x128xi32>
    %29 = arith.cmpi eq, %27, %28 : vector<128x128xi32>
    %30 = arith.andi %29, %14 : vector<128x128xi1>
    %cst_11 = arith.constant dense<true> : vector<128x128xi1>
    %31 = arith.xori %15, %cst_11 : vector<128x128xi1>
    %32 = arith.andi %30, %31 : vector<128x128xi1>
    %cst_12 = arith.constant 1.000000e+00 : f32
    %cst_13 = arith.constant 0.000000e+00 : f32
    %33 = vector.broadcast %cst_12 : f32 to vector<128x128xf32>
    %34 = vector.broadcast %cst_13 : f32 to vector<128x128xf32>
    %35 = arith.select %32, %33, %34 : vector<128x128xi1>, vector<128x128xf32>
    %cst_14 = arith.constant 1.000000e+00 : f32
    %36 = vector.broadcast %cst_14 : f32 to vector<128x1xf32>
    %cst_15 = arith.constant dense<0.000000e+00> : vector<128x1xf32>
    %37 = tpu.matmul %24, %36, %cst_15 {dimension_numbers = #tpu.dot_dimension_numbers<[1], [0], [0], [1], [0, 0, 1, 1], [], []>} : vector<128x128xf32>, vector<128x1xf32>, vector<128x1xf32> -> vector<128x1xf32>
    %cst_16 = arith.constant 9.99999993E-9 : f32
    %38 = vector.broadcast %cst_16 : f32 to vector<128x1xf32>
    %39 = arith.addf %37, %38 : vector<128x1xf32>
    %cst_17 = arith.constant dense<0.000000e+00> : vector<128x1xf32>
    %40 = tpu.matmul %35, %36, %cst_17 {dimension_numbers = #tpu.dot_dimension_numbers<[1], [0], [0], [1], [0, 0, 1, 1], [], []>} : vector<128x128xf32>, vector<128x1xf32>, vector<128x1xf32> -> vector<128x1xf32>
    %41 = arith.mulf %35, %23 : vector<128x128xf32>
    %cst_18 = arith.constant dense<0.000000e+00> : vector<128x1xf32>
    %42 = tpu.matmul %41, %36, %cst_18 {dimension_numbers = #tpu.dot_dimension_numbers<[1], [0], [0], [1], [0, 0, 1, 1], [], []>} : vector<128x128xf32>, vector<128x1xf32>, vector<128x1xf32> -> vector<128x1xf32>
    %43 = math.log %39 : vector<128x1xf32>
    %44 = arith.mulf %40, %43 : vector<128x1xf32>
    %45 = arith.subf %42, %44 : vector<128x1xf32>
    %cst_19 = arith.constant 9.99999993E-9 : f32
    %46 = vector.broadcast %cst_19 : f32 to vector<128x1xf32>
    %47 = arith.addf %40, %46 : vector<128x1xf32>
    %48 = arith.divf %45, %47 : vector<128x1xf32>
    %cst_20 = arith.constant 0.000000e+00 : f32
    %49 = vector.broadcast %cst_20 : f32 to vector<128x1xf32>
    %50 = arith.subf %49, %48 : vector<128x1xf32>
    %c0_21 = arith.constant 0 : index
    %c0_22 = arith.constant 0 : index
    %51 = vector.load %arg4[%c0_21, %c0_22] : memref<128x1xf32, #tpu.memory_space<vmem>>, vector<128x1xf32>
    tpu.vector_store %arg4[%c0_21, %c0_22], %50 {strides = array<i32>} : memref<128x1xf32, #tpu.memory_space<vmem>>, vector<128x1xf32>,
    return
  }
  func.func @transform_0(%arg0: i32) -> (i32, i32) {
    %c0_i32 = arith.constant 0 : i32
    %c0_i32_0 = arith.constant 0 : i32
    %c0_i32_1 = arith.constant 0 : i32
    return %c0_i32, %c0_i32_0 : i32, i32
  }
  func.func @transform_1(%arg0: i32) -> (i32, i32) {
    %c0_i32 = arith.constant 0 : i32
    %c0_i32_0 = arith.constant 0 : i32
    return %arg0, %c0_i32 : i32, i32
  }
  func.func @transform_2(%arg0: i32) -> (i32, i32) {
    %c0_i32 = arith.constant 0 : i32
    %c0_i32_0 = arith.constant 0 : i32
    %c0_i32_1 = arith.constant 0 : i32
    return %c0_i32, %c0_i32_0 : i32, i32
  }
  func.func @transform_3(%arg0: i32) -> (i32, i32) {
    %c0_i32 = arith.constant 0 : i32
    %c0_i32_0 = arith.constant 0 : i32
    return %arg0, %c0_i32 : i32, i32
  }
}

</mosaic_0001>

<bundles_post_ra>
// kernel: tpu_custom_call.1
= control target key start
LH: loop header
LB: loop body
LE: loop exit
PB: predicated region body
PF: predicated region fallthrough
CT: control target
= control target key end

     0   :  { %v1705_v16 = vmov 0   ;;  %v261_v17 = vlaneseq  ;;  %v1706_v29 = vmov 1.0|1.0   ;;  %vm2818_vm14 = vmmov 1   ;;  %s2801_s0 = inlined_call_operand.vmem [shape: bf16[128,128], index: 0, kind: input, shape index: {}]   ;;  %s2802_s1 = inlined_call_operand.vmem [shape: s32[128,1], index: 1, kind: input, shape index: {}]   ;;  %s2803_s2 = inlined_call_operand.vmem [shape: s32[1,128], index: 2, kind: input, shape index: {}]   ;;  %s2804_s3 = inlined_call_operand.vmem [shape: f32[128,1], index: 3, kind: output, shape index: {}]  }
   0x1   :  { %v1593_v0 = vld [vmem:[%s2801_s0] sm:$0xff]   ;;  %v1594_v1 = vld [vmem:[%s2801_s0 + $0x8] sm:$0xff]   ;;  %v1595_v2 = vld [vmem:[%s2801_s0 + $0x10] sm:$0xff]   ;;  %1592 = vset.pattern.permute.xlu1 %v1705_v16  ;;  %1591 = vset.pattern.permute.xlu0 %v1705_v16 }
   0x2   :  { %1322 = vmatprep.subr.bf16.mxu0 %v1593_v0  ;;  %v1601_v3 = vld [vmem:[%s2801_s0] sm:$0xff]   ;;  %v1596_v4 = vld [vmem:[%s2801_s0 + $0x18] sm:$0xff]   ;;  %v1598_v6 = vld [vmem:[%s2801_s0 + $0x28] sm:$0xff]   ;;  %v1779_v18 = vand.u32 127, %v261_v17  ;;  %1522 = vmatprep.subr.bf16.mxu1 %v1706_v29 }
   0x3   :  { %1323 = vmatpush3.bf16.xpose.msra.mxu0 %v1593_v0  ;;  %1338 = vmatprep.mubr.bf16.mxu0 %v1601_v3  ;;  %v1597_v5 = vld [vmem:[%s2801_s0 + $0x20] sm:$0xff]   ;;  %v1599_v7 = vld [vmem:[%s2801_s0 + $0x30] sm:$0xff]   ;;  %v1600_v8 = vld [vmem:[%s2801_s0 + $0x38] sm:$0xff]  }
   0x4   :  { %1324 = vmatprep.subr.bf16.mxu0 %v1594_v1  ;;  %v1602_v9 = vld [vmem:[%s2801_s0 + $0x8] sm:$0xff]   ;;  %v1603_v10 = vld [vmem:[%s2801_s0 + $0x10] sm:$0xff]   ;;  %v1604_v11 = vld [vmem:[%s2801_s0 + $0x18] sm:$0xff]   ;;  %vm2817_vm0 = vcmp.lt.s32.totalorder %v1779_v18, 8  ;;  %1523 = vmatpush3.bf16.msra.mxu1 %v1706_v29 }
   0x5   :  { %v1605_v12 = vld [vmem:[%s2801_s0 + $0x20] sm:$0xff]   ;;  %v1606_v13 = vld [vmem:[%s2801_s0 + $0x28] sm:$0xff]   ;;  %v1607_v14 = vld [vmem:[%s2801_s0 + $0x30] sm:$0xff]   ;;  %1524 = vmatprep.subr.bf16.mxu1 %v1706_v29 }
   0x6   :  { %v1608_v15 = vld [vmem:[%s2801_s0 + $0x38] sm:$0xff]   ;;  %v427_v0 = vld [vmem:[%s2802_s1 + $0x8] sm:$0xff]  ;;  %v430_v3 = vld [vmem:[%s2802_s1 + $0x20] sm:$0xff] }
   0x7   :  { %v434_v16 = vld [vmem:[%s2802_s1 + $0x40] sm:$0xff] }
   0x8   :  { %1525 = vmatpush3.bf16.msra.mxu1 %v1706_v29 }
   0x9   :  { %1526 = vmatprep.subr.bf16.mxu1 %v1706_v29 }
   0xb   :  { %1325 = vmatpush3.bf16.xpose.msra.mxu0 %v1594_v1  ;;  %v428_v1 = vld [vmem:[%s2802_s1 + $0x10] sm:$0xff] }
   0xc   :  { %1326 = vmatprep.subr.bf16.mxu0 %v1595_v2  ;;  %1527 = vmatpush3.bf16.msra.mxu1 %v1706_v29 }
   0xd   :  { %1528 = vmatprep.subr.bf16.mxu1 %v1706_v29 }
  0x10   :  { %1529 = vmatpush3.bf16.msra.mxu1 %v1706_v29 }
  0x11   :  { %1530 = vmatprep.subr.bf16.mxu1 %v1706_v29 }
  0x13   :  { %1327 = vmatpush3.bf16.xpose.msra.mxu0 %v1595_v2  ;;  %v429_v2 = vld [vmem:[%s2802_s1 + $0x18] sm:$0xff] }
  0x14   :  { %1328 = vmatprep.subr.bf16.mxu0 %v1596_v4  ;;  %1531 = vmatpush3.bf16.msra.mxu1 %v1706_v29 }
  0x15   :  { %1532 = vmatprep.subr.bf16.mxu1 %v1706_v29 }
  0x18   :  { %1533 = vmatpush3.bf16.msra.mxu1 %v1706_v29 }
  0x19   :  { %1534 = vmatprep.subr.bf16.mxu1 %v1706_v29 }
  0x1b   :  { %1329 = vmatpush3.bf16.xpose.msra.mxu0 %v1596_v4  ;;  %v426_v4 = vld [vmem:[%s2802_s1] sm:$0xff] }
  0x1c   :  { %1330 = vmatprep.subr.bf16.mxu0 %v1597_v5  ;;  %1535 = vmatpush3.bf16.msra.mxu1 %v1706_v29 }
  0x1d   :  { %1536 = vmatprep.subr.bf16.mxu1 %v1706_v29 }
  0x20   :  { %1537 = vmatpush3.bf16.msra.mxu1 %v1706_v29 }
  0x21   :  { %1538 = vmatprep.subr.bf16.mxu1 %v1706_v29 }
  0x23   :  { %1331 = vmatpush3.bf16.xpose.msra.mxu0 %v1597_v5  ;;  %v431_v5 = vld [vmem:[%s2802_s1 + $0x28] sm:$0xff] }
  0x24   :  { %1332 = vmatprep.subr.bf16.mxu0 %v1598_v6 }
  0x2b   :  { %1333 = vmatpush3.bf16.xpose.msra.mxu0 %v1598_v6  ;;  %v435_v6 = vld [vmem:[%s2802_s1 + $0x48] sm:$0xff] }
  0x2c   :  { %1334 = vmatprep.subr.bf16.mxu0 %v1599_v7 }
  0x33   :  { %1335 = vmatpush3.bf16.xpose.msra.mxu0 %v1599_v7  ;;  %v437_v7 = vld [vmem:[%s2802_s1 + $0x58] sm:$0xff] }
  0x34   :  { %1336 = vmatprep.subr.bf16.mxu0 %v1600_v8 }
  0x3b   :  { %1337 = vmatpush3.bf16.xpose.msra.mxu0 %v1600_v8  ;;  %v439_v8 = vld [vmem:[%s2802_s1 + $0x68] sm:$0xff] }
  0x3c   :  { %1554 = vmatprep.subr.bf16.mxu0 %v1706_v29 }
  0x42   :  { %1339 = vmatmul.mubr.bf16.vlgmr.msra.gmra.mrb[0].mxu0 %v1602_v9  ;;  %v441_v9 = vld [vmem:[%s2802_s1 + $0x78] sm:$0xff] }
  0x43   :  { %1342 = vmatprep.mubr.bf16.mxu0 %v1603_v10  ;;  %1555 = vmatpush3.bf16.msra.mxu0 %v1706_v29 }
  0x44   :  { %1556 = vmatprep.subr.bf16.mxu0 %v1706_v29 }
  0x47   :  { %1557 = vmatpush3.bf16.msra.mxu0 %v1706_v29 }
  0x48   :  { %1558 = vmatprep.subr.bf16.mxu0 %v1706_v29 }
  0x4a   :  { %1343 = vmatmul.mubr.bf16.gmra.mrb[4].mxu0 %v1604_v11 }
  0x4b   :  { %1346 = vmatprep.mubr.bf16.mxu0 %v1605_v12  ;;  %1559 = vmatpush3.bf16.msra.mxu0 %v1706_v29 }
  0x4c   :  { %1560 = vmatprep.subr.bf16.mxu0 %v1706_v29 }
  0x4f   :  { %1561 = vmatpush3.bf16.msra.mxu0 %v1706_v29 }
  0x50   :  { %1562 = vmatprep.subr.bf16.mxu0 %v1706_v29 }
  0x52   :  { %1347 = vmatmul.mubr.bf16.gmra.mrb[8].mxu0 %v1606_v13 }
  0x53   :  { %1350 = vmatprep.mubr.bf16.mxu0 %v1607_v14  ;;  %1563 = vmatpush3.bf16.msra.mxu0 %v1706_v29  ;;  %v432_v14 = vld [vmem:[%s2802_s1 + $0x30] sm:$0xff] }
  0x54   :  { %1564 = vmatprep.subr.bf16.mxu0 %v1706_v29 }
  0x57   :  { %1565 = vmatpush3.bf16.msra.mxu0 %v1706_v29 }
  0x58   :  { %1566 = vmatprep.subr.bf16.mxu0 %v1706_v29 }
  0x5a   :  { %1351 = vmatmul.mubr.bf16.gmra.mrb[12].mxu0 %v1608_v15  ;;  %v433_v15 = vld [vmem:[%s2802_s1 + $0x38] sm:$0xff] }
  0x5b   :  { %1567 = vmatpush3.bf16.msra.mxu0 %v1706_v29 }
  0x5c   :  { %1568 = vmatprep.subr.bf16.mxu0 %v1706_v29 }
  0x5f   :  { %1569 = vmatpush3.bf16.msra.mxu0 %v1706_v29 }
 0x115   :  { %v1340_v19 = vpop.f32.mrb[0].mxu0 }
 0x116   :  { %v247_v20 = vmul.f32 14.285714, %v1340_v19  ;;  %v182_v21 = vpop.f32.mrb[1].mxu0  ;;  %v436_v19 = vld [vmem:[%s2802_s1 + $0x50] sm:$0xff] }
 0x117   :  { %v245_v22 = vmul.f32 14.285714, %v182_v21  ;;  %v1341_v23 = vpop.f32.mrb[2].mxu0  ;;  %v440_v21 = vld [vmem:[%s2802_s1 + $0x70] sm:$0xff] }
 0x118   :  { %v248_v24 = vmul.f32 14.285714, %v1341_v23  ;;  %v185_v25 = vpop.f32.mrb[3].mxu0  ;;  %v1784_v26 = vsel %vm2817_vm0, %v247_v20, -1e+30  ;;  %v438_v20 = vld [vmem:[%s2802_s1 + $0x60] sm:$0xff] }
 0x119   :  { %v246_v27 = vmul.f32 14.285714, %v185_v25  ;;  %334 = vmax.xlane.f32.xlu1 %v1784_v26  ;;  %v1789_v28 = vsel %vm2817_vm0, %v245_v22, -1e+30  ;;  %v1944_v22 = vshrl.u32 %v261_v17, 7 }
 0x11a   :  { %330 = vmax.xlane.f32.xlu0 %v1789_v28  ;;  %v1797_v30 = vsel %vm2817_vm0, %v248_v24, -1e+30 }
 0x11b   :  { %v1804_v32 = vsel %vm2817_vm0, %v246_v27, -1e+30  ;;  %v1947_v23 = vadd.s32 16, %v1944_v22  ;;  %v1950_v25 = vadd.s32 24, %v1944_v22  ;;  %vm298_vm1 = vcmp.eq.s32.totalorder %v1779_v18, %v1944_v22 }
 0x11d   :  { %336 = vmax.xlane.f32.xlu1 %v1797_v30  ;;  %v1344_v31 = vpop.f32.mrb[4].mxu0  ;;  %vm300_vm2 = vcmp.eq.s32.totalorder %v1779_v18, %v1947_v23  ;;  %vm301_vm3 = vcmp.eq.s32.totalorder %v1779_v18, %v1950_v25 }
 0x11e   :  { %v251_v33 = vmul.f32 14.285714, %v1344_v31  ;;  %332 = vmax.xlane.f32.xlu0 %v1804_v32  ;;  %v198_v34 = vpop.f32.mrb[5].mxu0 }
 0x11f   :  { %v1345_v35 = vpop.f32.mrb[6].mxu0  ;;  %v249_v39 = vmul.f32 14.285714, %v198_v34 }
 0x120   :  { %v252_v36 = vmul.f32 14.285714, %v1345_v35  ;;  %v201_v37 = vpop.f32.mrb[7].mxu0  ;;  %v1811_v38 = vsel %vm2817_vm0, %v251_v33, -1e+30  ;;  %v1956_v33 = vadd.s32 8, %v1944_v22 }
 0x121   :  { %v250_v40 = vmul.f32 14.285714, %v201_v37  ;;  %v1827_v43 = vsel %vm2817_vm0, %v249_v39, -1e+30 }
 0x122   :  { %342 = vmax.xlane.f32.xlu0 %v1811_v38  ;;  %v1819_v41 = vsel %vm2817_vm0, %v252_v36, -1e+30  ;;  %vm299_vm4 = vcmp.eq.s32.totalorder %v1779_v18, %v1956_v33 }
 0x123   :  { %344 = vmax.xlane.f32.xlu1 %v1819_v41  ;;  %v1833_v46 = vsel %vm2817_vm0, %v250_v40, -1e+30  ;;  %v1979_v40 = vadd.s32 48, %v1944_v22  ;;  %vm2113_vm15 = vmxor %vm299_vm4, %vm2818_vm14 }
 0x125   :  { %v1348_v42 = vpop.f32.mrb[8].mxu0  ;;  %vm2812_vm5 = vcmp.eq.s32.totalorder %v1779_v18, %v1979_v40 }
 0x126   :  { %v255_v44 = vmul.f32 14.285714, %v1348_v42  ;;  %338 = vmax.xlane.f32.xlu0 %v1827_v43  ;;  %v214_v45 = vpop.f32.mrb[9].mxu0 }
 0x127   :  { %340 = vmax.xlane.f32.xlu1 %v1833_v46  ;;  %v1349_v47 = vpop.f32.mrb[10].mxu0  ;;  %v253_v51 = vmul.f32 14.285714, %v214_v45 }
 0x128   :  { %v256_v48 = vmul.f32 14.285714, %v1349_v47  ;;  %v217_v49 = vpop.f32.mrb[11].mxu0  ;;  %v1839_v50 = vsel %vm2817_vm0, %v255_v44, -1e+30 }
 0x129   :  { %v254_v52 = vmul.f32 14.285714, %v217_v49  ;;  %v1855_v54 = vsel %vm2817_vm0, %v253_v51, -1e+30  ;;  %v2000_v49 = vadd.s32 56, %v1944_v22 }
 0x12a   :  { %350 = vmax.xlane.f32.xlu0 %v1839_v50  ;;  %v1847_v53 = vsel %vm2817_vm0, %v256_v48, -1e+30 }
 0x12b   :  { %352 = vmax.xlane.f32.xlu1 %v1847_v53  ;;  %v1861_v57 = vsel %vm2817_vm0, %v254_v52, -1e+30  ;;  %v2003_v52 = vadd.s32 40, %v1944_v22  ;;  %vm2811_vm7 = vcmp.eq.s32.totalorder %v1779_v18, %v2000_v49 }
 0x12d   :  { %v1352_v55 = vpop.f32.mrb[12].mxu0  ;;  %vm2813_vm8 = vcmp.eq.s32.totalorder %v1779_v18, %v2003_v52 }
 0x12e   :  { %346 = vmax.xlane.f32.xlu0 %v1855_v54  ;;  %v259_v56 = vmul.f32 14.285714, %v1352_v55  ;;  %v230_v58 = vpop.f32.mrb[13].mxu0 }
 0x12f   :  { %348 = vmax.xlane.f32.xlu1 %v1861_v57  ;;  %v257_v59 = vmul.f32 14.285714, %v230_v58  ;;  %v1353_v60 = vpop.f32.mrb[14].mxu0 }
 0x130   :  { %v1867_v61 = vsel %vm2817_vm0, %v259_v56, -1e+30  ;;  %v233_v62 = vpop.f32.mrb[15].mxu0  ;;  %v260_v10 = vmul.f32 14.285714, %v1353_v60 }
 0x131   :  { %v1875_v63 = vsel %vm2817_vm0, %v257_v59, -1e+30  ;;  %v258_v11 = vmul.f32 14.285714, %v233_v62  ;;  %v2020_v62 = vadd.s32 80, %v1944_v22 }
 0x132   :  { %358 = vmax.xlane.f32.xlu0 %v1867_v61  ;;  %v1917_v12 = vsel %vm2817_vm0, %v260_v10, -1e+30  ;;  %v2051_v10 = vadd.s32 72, %v1944_v22 }
 0x133   :  { %v1922_v13 = vsel %vm2817_vm0, %v258_v11, -1e+30  ;;  %vm2805_vm9 = vcmp.eq.s32.totalorder %v1779_v18, %v2020_v62 }
 0x134   :  { %vm2808_vm12 = vcmp.eq.s32.totalorder %v1779_v18, %v2051_v10 }
 0x136   :  { %354 = vmax.xlane.f32.xlu0 %v1875_v63 }
 0x140   :  { %447 = vperm.xlu1 %1592, %v427_v0  }
 0x144   :  { %450 = vperm.xlu1 %1592, %v428_v1  }
 0x148   :  { %453 = vperm.xlu1 %1592, %v429_v2   ;;  %v2030_v2 = vadd.s32 88, %v1944_v22 }
 0x14a   :  { %vm2807_vm11 = vcmp.eq.s32.totalorder %v1779_v18, %v2030_v2 }
 0x14c   :  { %456 = vperm.xlu1 %1592, %v430_v3   ;;  %444 = vperm.xlu0 %1591, %v426_v4  }
 0x150   :  { %459 = vperm.xlu1 %1592, %v431_v5   ;;  %471 = vperm.xlu0 %1591, %v435_v6  }
 0x154   :  { %477 = vperm.xlu0 %1591, %v437_v7  }
 0x158   :  { %483 = vperm.xlu0 %1591, %v439_v8  }
 0x15c   :  { %489 = vperm.xlu0 %1591, %v441_v9  }
 0x174   :  { %360 = vmax.xlane.f32.xlu1 %v1917_v12 }
 0x178   :  { %356 = vmax.xlane.f32.xlu1 %v1922_v13 }
 0x189   :  { %462 = vperm.xlu1 %1592, %v432_v14  }
 0x18d   :  { %465 = vperm.xlu1 %1592, %v433_v15  }
 0x191   :  { %468 = vperm.xlu1 %1592, %v434_v16  }
 0x195   :  { %474 = vperm.xlu1 %1592, %v436_v19   ;;  %v2063_v19 = vadd.s32 112, %v1944_v22 }
 0x197   :  { %vm2809_vm13 = vcmp.eq.s32.totalorder %v1779_v18, %v2063_v19 }
 0x199   :  { %480 = vperm.xlu1 %1592, %v438_v20  }
 0x19d   :  { %486 = vperm.xlu1 %1592, %v440_v21  }
 0x1a6   :  { %v335_v24 = vpop.xlane.xlu1 %334 }
 0x1a7   :  { %v364_v27 = vsub.f32 %v1784_v26, %v335_v24  ;;  %v331_v31 = vpop.xlane.xlu0 %330 }
 0x1a8   :  { %v362_v17 = vsub.f32 %v1789_v28, %v331_v31 }
 0x1a9   :  { %v1971_v35 = vsel %vm300_vm2, -1e+30, %v364_v27 }
 0x1aa   :  { %v1964_v34 = vsel %vm298_vm1, -1e+30, %v362_v17  ;;  %v337_v26 = vpop.xlane.xlu1 %336  ;;  %v398_v42 = vmul.f32 1.442695, %v1971_v35 }
 0x1ab   :  { %v365_v36 = vsub.f32 %v1797_v30, %v337_v26  ;;  %v333_v28 = vpop.xlane.xlu0 %332  ;;  %v394_v37 = vmul.f32 1.442695, %v1964_v34 }
 0x1ac   :  { %v363_v39 = vsub.f32 %v1804_v32, %v333_v28  ;;  %v1994_v32 = vadd.s32 32, %v1944_v22 }
 0x1ad   :  { %1609 = vpow2.f32 %v394_v37  ;;  %v1985_v44 = vsel %vm301_vm3, -1e+30, %v365_v36 }
 0x1ae   :  { %v1990_v30 = vsel %vm299_vm4, -1e+30, %v363_v39  ;;  %v400_v55 = vmul.f32 1.442695, %v1985_v44  ;;  %vm302_vm6 = vcmp.eq.s32.totalorder %v1779_v18, %v1994_v32  ;;  %vm2134_vm4 = vmxor %vm301_vm3, %vm2818_vm14 }
 0x1af   :  { %v396_v45 = vmul.f32 1.442695, %v1990_v30  ;;  %v343_v47 = vpop.xlane.xlu0 %342 }
 0x1b0   :  { %v368_v48 = vsub.f32 %v1811_v38, %v343_v47  ;;  %v345_v51 = vpop.xlane.xlu1 %344 }
 0x1b1   :  { %1611 = vpow2.f32 %v396_v45  ;;  %v369_v58 = vsub.f32 %v1819_v41, %v345_v51 }
 0x1b2   :  { %1613 = vpow2.f32 %v398_v42  ;;  %v2009_v56 = vsel %vm2812_vm5, -1e+30, %v368_v48  ;;  %v2100_v42 = vld [vmem:[%s2803_s2] ss:$0 sm:$0xff] }
 0x1b3   :  { %v339_v38 = vpop.xlane.xlu0 %338  ;;  %1615 = vpow2.f32 %v400_v55  ;;  %v406_v41 = vmul.f32 1.442695, %v2009_v56  ;;  %v2038_v4 = vsel %vm2811_vm7, -1e+30, %v369_v58 }
 0x1b4   :  { %v366_v59 = vsub.f32 %v1827_v43, %v339_v38  ;;  %v341_v60 = vpop.xlane.xlu1 %340  ;;  %v2033_v43 = vadd.s32 64, %v1944_v22  ;;  %v408_v11 = vmul.f32 1.442695, %v2038_v4 }
 0x1b5   :  { %v367_v0 = vsub.f32 %v1833_v46, %v341_v60  ;;  %v2849_v60 = vmov 0 }
 0x1b6   :  { %v2027_v1 = vsel %vm302_vm6, -1e+30, %v366_v59  ;;  %vm2806_vm10 = vcmp.eq.s32.totalorder %v1779_v18, %v2033_v43  ;;  %v2850_v60 = vsel %vm2134_vm4, 4294967295, %v2849_v60 }
 0x1b7   :  { %v1610_v3 = vpop.eup %1609  ;;  %v402_v46 = vmul.f32 1.442695, %v2027_v1  ;;  %v2044_v5 = vsel %vm2813_vm8, -1e+30, %v367_v0  ;;  %v351_v6 = vpop.xlane.xlu0 %350 }
 0x1b8   :  { %v404_v7 = vmul.f32 1.442695, %v2044_v5  ;;  %v372_v8 = vsub.f32 %v1839_v50, %v351_v6  ;;  %1386 = vmatprep.mubr.f32.mxu1 %v1610_v3  ;;  %v353_v9 = vpop.xlane.xlu1 %352  ;;  %v2855_v3 = vmov 0 }
 0x1b9   :  { %1617 = vpow2.f32 %v402_v46  ;;  %v373_v50 = vsub.f32 %v1847_v53, %v353_v9 }
 0x1ba   :  { %1619 = vpow2.f32 %v404_v7  ;;  %v2059_v15 = vsel %vm2805_vm9, -1e+30, %v372_v8 }
 0x1bb   :  { %v1612_v14 = vpop.eup %1611  ;;  %1621 = vpow2.f32 %v406_v41  ;;  %v347_v16 = vpop.xlane.xlu0 %346  ;;  %v414_v53 = vmul.f32 1.442695, %v2059_v15 }
 0x1bc   :  { %v1614_v20 = vpop.eup %1613  ;;  %v370_v21 = vsub.f32 %v1855_v54, %v347_v16  ;;  %1387 = vmatmul.mubr.f32.vlgmr.msra.gmra.mrb[0].mxu1 %v1612_v14  ;;  %v349_v24 = vpop.xlane.xlu1 %348  ;;  %1623 = vpow2.f32 %v408_v11  ;;  %v2079_v54 = vadd.s32 96, %v1944_v22  ;;  %v2931_v16 = vmov 0 }
 0x1bd   :  { %v371_v27 = vsub.f32 %v1861_v57, %v349_v24  ;;  %1389 = vmatprep.mubr.f32.mxu1 %v1614_v20  ;;  %1539 = vmatpush3.bf16.msra.mxu1 %v1706_v29  ;;  %v1616_v17 = vpop.eup %1615  ;;  %v2085_v57 = vsel %vm2807_vm11, -1e+30, %v373_v50  ;;  %vm2125_vm11 = vmxor %vm300_vm2, %vm2818_vm14  ;;  %v1708_v20 = vmov 0.0  }
 0x1be   :  { %v2076_v31 = vsel %vm2806_vm10, -1e+30, %v370_v21  ;;  %1540 = vmatprep.subr.bf16.mxu1 %v1706_v29  ;;  %v416_v47 = vmul.f32 1.442695, %v2085_v57  ;;  %vm2810_vm10 = vcmp.eq.s32.totalorder %v1779_v18, %v2079_v54  ;;  %vm2143_vm2 = vmxor %vm298_vm1, %vm2818_vm14 }
 0x1bf   :  { %v410_v26 = vmul.f32 1.442695, %v2076_v31  ;;  %v2091_v36 = vsel %vm2808_vm12, -1e+30, %v371_v27  ;;  %v359_v28 = vpop.xlane.xlu0 %358  ;;  %vm2164_vm1 = vmxor %vm302_vm6, %vm2818_vm14 }
 0x1c0   :  { %v412_v37 = vmul.f32 1.442695, %v2091_v36  ;;  %v376_v39 = vsub.f32 %v1867_v61, %v359_v28  ;;  %1390 = vmatmul.mubr.f32.gmra.mrb[2].mxu1 %v1616_v17  ;;  %v448_v45 = vpop.permute.xlu1 %447  ;;  %v2856_v3 = vsel %vm2164_vm1, 4294967295, %v2855_v3 }
 0x1c1   :  { %1625 = vpow2.f32 %v410_v26  ;;  %1541 = vmatpush3.bf16.msra.mxu1 %v1706_v29  ;;  %vm496_vm9 = vcmp.eq.s32.totalorder %v448_v45, %v2100_v42 }
 0x1c2   :  { %1627 = vpow2.f32 %v412_v37  ;;  %v2107_v48 = vsel %vm2809_vm13, -1e+30, %v376_v39  ;;  %1542 = vmatprep.subr.bf16.mxu1 %v1706_v29  ;;  %vm2149_vm13 = vmand %vm496_vm9, %vm2817_vm0  ;;  %v2866_v39 = vmov 0 }
 0x1c3   :  { %v1618_v51 = vpop.eup %1617  ;;  %1629 = vpow2.f32 %v414_v53  ;;  %v355_v55 = vpop.xlane.xlu0 %354  ;;  %vm2815_vm9 = vmand %vm2149_vm13, %vm2113_vm15  ;;  %v2863_v53 = vmov 0 }
 0x1c4   :  { %v1620_v58 = vpop.eup %1619  ;;  %v374_v38 = vsub.f32 %v1875_v63, %v355_v55  ;;  %1392 = vmatprep.mubr.f32.mxu1 %v1618_v51  ;;  %v451_v59 = vpop.permute.xlu1 %450  ;;  %1631 = vpow2.f32 %v416_v47  ;;  %v560_v21 = vsel %vm2815_vm9, 1.0, %v1708_v20  ;;  %v2870_v47 = vmov 0 }
 0x1c5   :  { %v1622_v0 = vpop.eup %1621  ;;  %vm497_vm12 = vcmp.eq.s32.totalorder %v451_v59, %v2100_v42  ;;  %1393 = vmatmul.mubr.f32.gmra.mrb[4].mxu1 %v1620_v58  ;;  %v866_v37 = vmul.f32 %v560_v21, %v1990_v30  ;;  %v2291_v59 = vadd.s32 120, %v1944_v22  ;;  %v2891_v63 = vmov 0 }
 0x1c6   :  { %v2156_v25 = vsel %vm2810_vm10, -1e+30, %v374_v38  ;;  %1395 = vmatprep.mubr.f32.mxu1 %v1622_v0  ;;  %1543 = vmatpush3.bf16.msra.mxu1 %v1706_v29  ;;  %v1624_v46 = vpop.eup %1623  ;;  %vm2171_vm3 = vmand %vm497_vm12, %vm2817_vm0  ;;  %v2288_v38 = vadd.s32 104, %v1944_v22 }
 0x1c7   :  { %v418_v41 = vmul.f32 1.442695, %v2156_v25  ;;  %1544 = vmatprep.subr.bf16.mxu1 %v1706_v29  ;;  %vm2814_vm12 = vmand %vm2171_vm3, %vm2125_vm11 }
 0x1c8   :  { %v454_v7 = vpop.permute.xlu1 %453  ;;  %v561_v24 = vsel %vm2814_vm12, 1.0, %v1708_v20 }
 0x1c9   :  { %1633 = vpow2.f32 %v418_v41  ;;  %vm498_vm6 = vcmp.eq.s32.totalorder %v454_v7, %v2100_v42  ;;  %1396 = vmatmul.mubr.f32.gmra.mrb[6].mxu1 %v1624_v46  ;;  %v867_v30 = vmul.f32 %v561_v24, %v1971_v35 }
 0x1ca   :  { %vm2182_vm10 = vmand %vm498_vm6, %vm2817_vm0  ;;  %1545 = vmatpush3.bf16.msra.mxu1 %v1706_v29 }
 0x1cb   :  { %v1626_v8 = vpop.eup %1625  ;;  %v445_v9 = vpop.permute.xlu0 %444  ;;  %1546 = vmatprep.subr.bf16.mxu1 %v1706_v29 }
 0x1cc   :  { %v1628_v11 = vpop.eup %1627  ;;  %vm495_vm7 = vcmp.eq.s32.totalorder %v445_v9, %v2100_v42  ;;  %1398 = vmatprep.mubr.f32.mxu1 %v1626_v8  ;;  %v457_v14 = vpop.permute.xlu1 %456 }
 0x1cd   :  { %v1630_v50 = vpop.eup %1629  ;;  %vm2199_vm5 = vmand %vm495_vm7, %vm2817_vm0  ;;  %vm499_vm8 = vcmp.eq.s32.totalorder %v457_v14, %v2100_v42  ;;  %1399 = vmatmul.mubr.f32.gmra.mrb[8].mxu1 %v1628_v11  ;;  %v2880_v11 = vmov 0 }
 0x1ce   :  { %vm2816_vm6 = vmand %vm2199_vm5, %vm2143_vm2  ;;  %1401 = vmatprep.mubr.f32.mxu1 %v1630_v50  ;;  %1547 = vmatpush3.bf16.msra.mxu1 %v1706_v29  ;;  %v1632_v17 = vpop.eup %1631 }
 0x1cf   :  { %v559_v27 = vsel %vm2816_vm6, 1.0, %v1708_v20  ;;  %vm2229_vm7 = vmand %vm499_vm8, %vm2817_vm0  ;;  %1548 = vmatprep.subr.bf16.mxu1 %v1706_v29  ;;  %vm2865_vm8 = vcmp.eq.s32.totalorder %v1779_v18, %v2003_v52 }
 0x1d0   :  { %v2864_v53 = vsel %vm2229_vm7, 4294967295, %v2863_v53  ;;  %vm2821_vm12 = vmand %vm2229_vm7, %vm2164_vm1  ;;  %v460_v26 = vpop.permute.xlu1 %459  ;;  %v865_v28 = vmul.f32 %v559_v27, %v1964_v34  ;;  %vm2882_vm7 = vcmp.lt.s32.totalorder %v1779_v18, 8 }
 0x1d1   :  { %vm2244_vm9 = vmxor %vm2865_vm8, %vm2818_vm14  ;;  %vm500_vm6 = vcmp.eq.s32.totalorder %v460_v26, %v2100_v42  ;;  %1402 = vmatmul.mubr.f32.gmra.mrb[10].mxu1 %v1632_v17  ;;  %v563_v45 = vsel %vm2821_vm12, 1.0, %v1708_v20  ;;  %vm2869_vm8 = vcmp.lt.s32.totalorder %v1779_v18, 8  ;;  %vm2873_vm12 = vcmp.eq.s32.totalorder %v1779_v18, %v1979_v40 }
 0x1d2   :  { %v2867_v39 = vsel %vm2244_vm9, 4294967295, %v2866_v39  ;;  %vm2868_vm0 = vmand %vm2182_vm10, %vm2134_vm4  ;;  %1498 = vmatprep.mubr.f32.mxu0 %v865_v28  ;;  %1549 = vmatpush3.bf16.msra.mxu1 %v1706_v29  ;;  %v869_v55 = vmul.f32 %v563_v45, %v2027_v1 }
 0x1d3   :  { %v562_v34 = vsel %vm2868_vm0, 1.0, %v1708_v20  ;;  %v1634_v52 = vpop.eup %1633  ;;  %vm2265_vm14 = vmand %vm500_vm6, %vm2869_vm8  ;;  %1499 = vmatmul.mubr.f32.vlgmr.msra.gmra.mrb[16].mxu0 %v866_v37  ;;  %1550 = vmatprep.subr.bf16.mxu1 %v1706_v29  ;;  %vm2825_vm6 = vcmp.eq.s32.totalorder %v1779_v18, %v2288_v38  ;;  %vm2824_vm8 = vcmp.eq.s32.totalorder %v1779_v18, %v2291_v59 }
 0x1d4   :  { %v2871_v47 = vsel %vm2265_vm14, 4294967295, %v2870_v47  ;;  %vm2820_vm0 = vmand %vm2265_vm14, %vm2244_vm9  ;;  %1404 = vmatprep.mubr.f32.mxu1 %v1634_v52  ;;  %1501 = vmatprep.mubr.f32.mxu0 %v867_v30  ;;  %v868_v35 = vmul.f32 %v562_v34, %v1985_v44  ;;  %v1709_v34 = vmov 1.0  }
 0x1d5   :  { %v564_v51 = vsel %vm2820_vm0, 1.0, %v1708_v20  ;;  %vm2872_vm0 = vmmov 1  }
 0x1d6   :  { %1551 = vmatpush3.bf16.msra.mxu1 %v1706_v29  ;;  %v870_v58 = vmul.f32 %v564_v51, %v2044_v5  ;;  %v422_v5 = vmul.f32 1.442695, %v2107_v48  ;;  %vm2315_vm9 = vmxor %vm2873_vm12, %vm2872_vm0 }
 0x1d7   :  { %1502 = vmatmul.mubr.f32.gmra.mrb[18].mxu0 %v868_v35  ;;  %1552 = vmatprep.subr.bf16.mxu1 %v1706_v29 }
 0x1d8   :  { %1504 = vmatprep.mubr.f32.mxu0 %v869_v55 }
 0x1da   :  { %1553 = vmatpush3.bf16.msra.mxu1 %v1706_v29 }
 0x1db   :  { %1505 = vmatmul.mubr.f32.gmra.mrb[20].mxu0 %v870_v58  ;;  %1570 = vmatprep.subr.bf16.mxu1 %v1706_v29 }
 0x201   :  { %v361_v44 = vpop.xlane.xlu1 %360 }
 0x202   :  { %v377_v1 = vsub.f32 %v1917_v12, %v361_v44 }
 0x204   :  { %v2303_v46 = vsel %vm2824_vm8, -1e+30, %v377_v1  ;;  %vm2876_vm8 = vcmp.lt.s32.totalorder %v1779_v18, 8 }
 0x205   :  { %v357_v0 = vpop.xlane.xlu1 %356  ;;  %v424_v8 = vmul.f32 1.442695, %v2303_v46 }
 0x206   :  { %v375_v41 = vsub.f32 %v1922_v13, %v357_v0 }
 0x208   :  { %v2308_v12 = vsel %vm2825_vm6, -1e+30, %v375_v41 }
 0x209   :  { %v420_v13 = vmul.f32 1.442695, %v2308_v12  ;;  %v463_v7 = vpop.permute.xlu1 %462 }
 0x20a   :  { %vm501_vm14 = vcmp.eq.s32.totalorder %v463_v7, %v2100_v42 }
 0x20b   :  { %1635 = vpow2.f32 %v420_v13  ;;  %vm2323_vm6 = vmand %vm501_vm14, %vm2876_vm8  ;;  %vm2879_vm14 = vcmp.eq.s32.totalorder %v1779_v18, %v2000_v49 }
 0x20c   :  { %1637 = vpow2.f32 %v422_v5  ;;  %vm2830_vm12 = vmand %vm2323_vm6, %vm2315_vm9 }
 0x20d   :  { %v565_v40 = vsel %vm2830_vm12, 1.0, %v1708_v20  ;;  %vm2341_vm8 = vmxor %vm2879_vm14, %vm2872_vm0  ;;  %v466_v14 = vpop.permute.xlu1 %465  ;;  %1639 = vpow2.f32 %v424_v8 }
 0x20e   :  { %v2881_v11 = vsel %vm2341_vm8, 4294967295, %v2880_v11  ;;  %vm502_vm1 = vcmp.eq.s32.totalorder %v466_v14, %v2100_v42  ;;  %v871_v50 = vmul.f32 %v565_v40, %v2009_v56 }
 0x20f   :  { %vm2349_vm4 = vmand %vm502_vm1, %vm2882_vm7  ;;  %vm2886_vm7 = vcmp.eq.s32.totalorder %v1779_v18, %v2063_v19  ;;  %v472_v19 = vpop.permute.xlu0 %471 }
 0x210   :  { %vm2829_vm14 = vmand %vm2349_vm4, %vm2341_vm8  ;;  %1507 = vmatprep.mubr.f32.mxu0 %v871_v50 }
 0x211   :  { %v566_v49 = vsel %vm2829_vm14, 1.0, %v1708_v20  ;;  %v469_v56 = vpop.permute.xlu1 %468  ;;  %vm2885_vm1 = vmand %vm2199_vm5, %vm2143_vm2  ;;  %vm2890_vm5 = vcmp.lt.s32.totalorder %v1779_v18, 8 }
 0x212   :  { %v872_v24 = vmul.f32 %v566_v49, %v2038_v4  ;;  %vm2374_vm14 = vmxor %vm2886_vm7, %vm2872_vm0  ;;  %v2887_v4 = vmov 0  ;;  %vm2899_vm7 = vcmp.eq.s32.totalorder %v1779_v18, %v2051_v10 }
 0x213   :  { %v2888_v4 = vsel %vm2374_vm14, 4294967295, %v2887_v4  ;;  %vm2889_vm8 = vmand %vm2149_vm13, %vm2113_vm15  ;;  %v478_v23 = vpop.permute.xlu0 %477 }
 0x214   :  { %1508 = vmatmul.mubr.f32.gmra.mrb[22].mxu0 %v872_v24 }
 0x215   :  { %v1636_v27 = vpop.eup %1635  ;;  %v475_v17 = vpop.permute.xlu1 %474 }
 0x216   :  { %v1638_v26 = vpop.eup %1637  ;;  %1405 = vmatmul.mubr.f32.gmra.mrb[12].mxu1 %v1636_v27 }
 0x217   :  { %1407 = vmatprep.mubr.f32.mxu1 %v1638_v26  ;;  %v1640_v28 = vpop.eup %1639  ;;  %v484_v6 = vpop.permute.xlu0 %483 }
 0x219   :  { %v481_v37 = vpop.permute.xlu1 %480 }
 0x21a   :  { %1408 = vmatmul.mubr.f32.gmra.mrb[14].mxu1 %v1640_v28 }
 0x21b   :  { %1442 = vmatprep.mubr.msk.f32.mxu1 %vm2885_vm1, %v1709_v34  ;;  %vm2893_vm1 = vmand %vm2171_vm3, %vm2125_vm11  ;;  %vm2894_vm11 = vnez %v2850_v60  ;;  %vm2896_vm3 = vnez %v2864_v53  ;;  %v2900_v60 = vmov 0 }
 0x21c   :  { %vm2895_vm15 = vmand %vm2182_vm10, %vm2894_vm11  ;;  %vm503_vm10 = vcmp.eq.s32.totalorder %v469_v56, %v2100_v42 }
 0x21d   :  { %v487_v30 = vpop.permute.xlu1 %486 }
 0x21e   :  { %vm509_vm12 = vcmp.eq.s32.totalorder %v487_v30, %v2100_v42  ;;  %1443 = vmatmul.mubr.msk.f32.vlgmr.msra.gmra.mrb[16].mxu1 %vm2889_vm8, %v1709_v34 }
 0x21f   :  { %vm2387_vm2 = vmand %vm509_vm12, %vm2890_vm5  ;;  %1578 = vmatpush3.bf16.msra.mxu1 %v1706_v29  ;;  %1445 = vmatprep.mubr.msk.f32.mxu1 %vm2893_vm1, %v1709_v34  ;;  %vm2897_vm12 = vnez %v2856_v3  ;;  %vm2902_vm1 = vcmp.eq.s32.totalorder %v1779_v18, %v2030_v2  ;;  %v2909_v2 = vmov 0 }
 0x220   :  { %v2892_v63 = vsel %vm2387_vm2, 4294967295, %v2891_v63  ;;  %vm2832_vm13 = vmand %vm2387_vm2, %vm2374_vm14  ;;  %1571 = vmatprep.subr.bf16.mxu1 %v1706_v29  ;;  %vm2914_vm14 = vcmp.lt.s32.totalorder %v1779_v18, 8 }
 0x221   :  { %v573_v61 = vsel %vm2832_vm13, 1.0, %v1708_v20  ;;  %vm2898_vm8 = vmand %vm2896_vm3, %vm2897_vm12  ;;  %vm504_vm12 = vcmp.eq.s32.totalorder %v472_v19, %v2100_v42  ;;  %vm2912_vm13 = vnez %v2867_v39  ;;  %v490_v39 = vpop.permute.xlu0 %489 }
 0x222   :  { %1446 = vmatmul.mubr.msk.f32.gmra.mrb[18].mxu1 %vm2895_vm15, %v1709_v34  ;;  %v2416_v33 = vmul.f32 %v573_v61, %v2107_v48  ;;  %vm2429_vm5 = vmxor %vm2899_vm7, %vm2872_vm0  ;;  %v2903_v48 = vmov 0  ;;  %vm2905_vm15 = vcmp.eq.s32.totalorder %v1779_v18, %v2033_v43 }
 0x223   :  { %1579 = vmatpush3.bf16.msra.mxu1 %v1706_v29  ;;  %1448 = vmatprep.mubr.msk.f32.mxu1 %vm2898_vm8, %v1709_v34  ;;  %v2901_v60 = vsel %vm2429_vm5, 4294967295, %v2900_v60  ;;  %vm2439_vm11 = vmxor %vm2902_vm1, %vm2872_vm0  ;;  %vm2908_vm8 = vcmp.eq.s32.totalorder %v1779_v18, %v2020_v62  ;;  %vm2911_vm1 = vnez %v2871_v47  ;;  %v2919_v62 = vmov 0 }
 0x224   :  { %1572 = vmatprep.subr.bf16.mxu1 %v1706_v29  ;;  %v2904_v48 = vsel %vm2439_vm11, 4294967295, %v2903_v48  ;;  %vm2447_vm3 = vmxor %vm2905_vm15, %vm2872_vm0  ;;  %vm505_vm11 = vcmp.eq.s32.totalorder %v475_v17, %v2100_v42 }
 0x225   :  { %vm2456_vm7 = vmxor %vm2908_vm8, %vm2872_vm0 }
 0x226   :  { %v2910_v2 = vsel %vm2456_vm7, 4294967295, %v2909_v2  ;;  %vm2913_vm15 = vmand %vm2911_vm1, %vm2912_vm13  ;;  %vm2918_vm13 = vcmp.eq.s32.totalorder %v1779_v18, %v2079_v54 }
 0x227   :  { %1449 = vmatmul.mubr.msk.f32.gmra.mrb[20].mxu1 %vm2913_vm15, %v1709_v34  ;;  %vm2468_vm2 = vmand %vm503_vm10, %vm2914_vm14 }
 0x228   :  { %1580 = vmatpush3.bf16.msra.mxu1 %v1706_v29  ;;  %vm2917_vm8 = vmand %vm2323_vm6, %vm2315_vm9  ;;  %vm506_vm9 = vcmp.eq.s32.totalorder %v478_v23, %v2100_v42  ;;  %vm2923_vm6 = vcmp.eq.s32.totalorder %v1779_v18, %v2288_v38 }
 0x229   :  { %1451 = vmatprep.mubr.msk.f32.mxu1 %vm2917_vm8, %v1709_v34  ;;  %vm2484_vm1 = vmxor %vm2918_vm13, %vm2872_vm0  ;;  %1573 = vmatprep.subr.bf16.mxu1 %v1706_v29 }
 0x22a   :  { %v2920_v62 = vsel %vm2484_vm1, 4294967295, %v2919_v62  ;;  %vm2491_vm10 = vmand %vm504_vm12, %vm2914_vm14  ;;  %vm2926_vm12 = vnez %v2881_v11 }
 0x22b   :  { %vm2500_vm15 = vmxor %vm2923_vm6, %vm2872_vm0  ;;  %vm507_vm6 = vcmp.eq.s32.totalorder %v481_v37, %v2100_v42 }
 0x22c   :  { %vm2837_vm8 = vmand %vm2468_vm2, %vm2447_vm3  ;;  %1581 = vmatpush3.bf16.msra.mxu1 %v1706_v29 }
 0x22d   :  { %vm2927_vm13 = vmand %vm2349_vm4, %vm2926_vm12  ;;  %1574 = vmatprep.subr.bf16.mxu1 %v1706_v29 }
 0x22e   :  { %1452 = vmatmul.mubr.msk.f32.gmra.mrb[22].mxu1 %vm2927_vm13, %v1709_v34  ;;  %vm2516_vm1 = vmand %vm505_vm11, %vm2914_vm14  ;;  %vm508_vm13 = vcmp.eq.s32.totalorder %v484_v6, %v2100_v42 }
 0x22f   :  { %1454 = vmatprep.mubr.msk.f32.mxu1 %vm2837_vm8, %v1709_v34  ;;  %vm2838_vm4 = vmand %vm2491_vm10, %vm2429_vm5  ;;  %vm2939_vm5 = vnez %v2920_v62 }
 0x230   :  { %vm2930_vm11 = vmmov %vm2914_vm14  ;;  %1582 = vmatpush3.bf16.msra.mxu1 %v1706_v29 }
 0x231   :  { %vm2535_vm12 = vmand %vm506_vm9, %vm2930_vm11  ;;  %1575 = vmatprep.subr.bf16.mxu1 %v1706_v29 }
 0x232   :  { %v2932_v16 = vsel %vm2535_vm12, 4294967295, %v2931_v16  ;;  %vm2841_vm14 = vmand %vm2516_vm1, %vm2456_vm7  ;;  %1455 = vmatmul.mubr.msk.f32.gmra.mrb[24].mxu1 %vm2838_vm4, %v1709_v34 }
 0x233   :  { %vm2933_vm8 = vmmov %vm2930_vm11  ;;  %1457 = vmatprep.mubr.msk.f32.mxu1 %vm2841_vm14, %v1709_v34  ;;  %vm2936_vm11 = vnez %v2904_v48  ;;  %vm510_vm14 = vcmp.eq.s32.totalorder %v490_v39, %v2100_v42 }
 0x234   :  { %vm2552_vm9 = vmand %vm507_vm6, %vm2933_vm8  ;;  %1583 = vmatpush3.bf16.msra.mxu1 %v1706_v29 }
 0x235   :  { %vm2842_vm4 = vmand %vm2535_vm12, %vm2936_vm11  ;;  %1576 = vmatprep.subr.bf16.mxu1 %v1706_v29  ;;  %vm2943_vm11 = vcmp.lt.s32.totalorder %v1779_v18, 8 }
 0x236   :  { %vm2570_vm6 = vmand %vm508_vm13, %vm2933_vm8  ;;  %1458 = vmatmul.mubr.msk.f32.gmra.mrb[26].mxu1 %vm2842_vm4, %v1709_v34  ;;  %vm2940_vm13 = vcmp.eq.s32.totalorder %v1779_v18, %v2291_v59 }
 0x237   :  { %vm555_vm7 = vmand %vm2552_vm9, %vm2939_vm5  ;;  %vm1154_vm5 = vcmask 7168  }
 0x238   :  { %1460 = vmatprep.mubr.msk.f32.mxu1 %vm555_vm7, %v1709_v34  ;;  %vm2596_vm8 = vmxor %vm2940_vm13, %vm2872_vm0  ;;  %1584 = vmatpush3.bf16.msra.mxu1 %v1706_v29  ;;  %v571_v44 = vsel %vm555_vm7, 1.0, %v1708_v20 }
 0x239   :  { %vm556_vm4 = vmand %vm2570_vm6, %vm2500_vm15  ;;  %1577 = vmatprep.subr.bf16.mxu1 %v1706_v29 }
 0x23a   :  { %vm2607_vm12 = vmand %vm510_vm14, %vm2943_vm11  ;;  %1461 = vmatmul.mubr.msk.f32.gmra.mrb[28].mxu1 %vm556_vm4, %v1709_v34  ;;  %vm2947_vm14 = vnez %v2892_v63  ;;  %vm2948_vm11 = vnez %v2888_v4 }
 0x23b   :  { %vm2946_vm0 = vmand %vm2468_vm2, %vm2447_vm3  ;;  %vm2950_vm2 = vnez %v2901_v60 }
 0x23c   :  { %v567_v47 = vsel %vm2946_vm0, 1.0, %v1708_v20  ;;  %vm2949_vm13 = vmand %vm2947_vm14, %vm2948_vm11  ;;  %vm2952_vm14 = vnez %v2910_v2  ;;  %1585 = vmatpush3.bf16.msra.mxu1 %v1706_v29 }
 0x23d   :  { %1463 = vmatprep.mubr.msk.f32.mxu1 %vm2949_vm13, %v1709_v34  ;;  %vm2951_vm3 = vmand %vm2491_vm10, %vm2950_vm2  ;;  %v873_v35 = vmul.f32 %v567_v47, %v2076_v31  ;;  %vm2954_vm10 = vnez %v2932_v16  ;;  %vm2955_vm13 = vnez %v2904_v48 }
 0x23e   :  { %v568_v18 = vsel %vm2951_vm3, 1.0, %v1708_v20  ;;  %vm558_vm0 = vmand %vm2607_vm12, %vm2596_vm8 }
 0x23f   :  { %vm2953_vm11 = vmand %vm2516_vm1, %vm2952_vm14  ;;  %1464 = vmatmul.mubr.msk.f32.gmra.mrb[30].mxu1 %vm558_vm0, %v1709_v34  ;;  %v874_v55 = vmul.f32 %v568_v18, %v2091_v36  ;;  %v572_v36 = vsel %vm556_vm4, 1.0, %v1708_v20 }
 0x240   :  { %v569_v51 = vsel %vm2953_vm11, 1.0, %v1708_v20  ;;  %1510 = vmatprep.mubr.f32.mxu1 %v873_v35  ;;  %vm2956_vm2 = vmand %vm2954_vm10, %vm2955_vm13  ;;  %v878_v38 = vmul.f32 %v572_v36, %v2308_v12 }
 0x241   :  { %v570_v31 = vsel %vm2956_vm2, 1.0, %v1708_v20  ;;  %v875_v58 = vmul.f32 %v569_v51, %v2059_v15  ;;  %v877_v15 = vmul.f32 %v571_v44, %v2156_v25 }
 0x242   :  { %v876_v29 = vmul.f32 %v570_v31, %v2085_v57  ;;  %v574_v57 = vsel %vm558_vm0, 1.0, %v1708_v20 }
 0x243   :  { %1511 = vmatmul.mubr.f32.vlgmr.msra.gmra.mrb[32].mxu1 %v874_v55  ;;  %v880_v59 = vmul.f32 %v574_v57, %v2303_v46 }
 0x244   :  { %1513 = vmatprep.mubr.f32.mxu1 %v875_v58 }
 0x247   :  { %1514 = vmatmul.mubr.f32.gmra.mrb[34].mxu1 %v876_v29 }
 0x248   :  { %1516 = vmatprep.mubr.f32.mxu1 %v877_v15 }
 0x24b   :  { %1517 = vmatmul.mubr.f32.gmra.mrb[36].mxu1 %v878_v38 }
 0x24c   :  { %1519 = vmatprep.mubr.f32.mxu1 %v2416_v33 }
 0x24f   :  { %1520 = vmatmul.mubr.f32.gmra.mrb[38].mxu1 %v880_v59 }
 0x28f   :  { %v1388_v1 = vpop.f32.mrb[0].mxu1 }
 0x290   :  { %v641_v0 = vpop.f32.mrb[1].mxu1  ;;  %v647_v49 = vadd.f32 1e-08, %v1388_v1 }
 0x291   :  { %v642_v56 = vadd.f32 1e-08, %v641_v0 }
 0x292   :  { %1641 = vlog2.f32 %v647_v49 }
 0x293   :  { %v1391_v25 = vpop.f32.mrb[2].mxu1  ;;  %1643 = vlog2.f32 %v642_v56 }
 0x294   :  { %v651_v41 = vpop.f32.mrb[3].mxu1  ;;  %v657_v24 = vadd.f32 1e-08, %v1391_v25 }
 0x295   :  { %v652_v27 = vadd.f32 1e-08, %v651_v41 }
 0x296   :  { %1645 = vlog2.f32 %v657_v24 }
 0x297   :  { %1647 = vlog2.f32 %v652_v27 }
 0x298   :  { %v1394_v5 = vpop.f32.mrb[4].mxu1 }
 0x299   :  { %v661_v13 = vpop.f32.mrb[5].mxu1  ;;  %v667_v17 = vadd.f32 1e-08, %v1394_v5 }
 0x29a   :  { %v662_v28 = vadd.f32 1e-08, %v661_v13 }
 0x29b   :  { %1649 = vlog2.f32 %v667_v17 }
 0x29c   :  { %v1397_v12 = vpop.f32.mrb[6].mxu1  ;;  %1651 = vlog2.f32 %v662_v28  ;;  %v1642_v19 = vpop.eup %1641 }
 0x29d   :  { %v671_v22 = vpop.f32.mrb[7].mxu1  ;;  %v677_v30 = vadd.f32 1e-08, %v1397_v12  ;;  %v1644_v33 = vpop.eup %1643  ;;  %v1029_v23 = vmul.f32 0.6931472, %v1642_v19 }
 0x29e   :  { %v672_v63 = vadd.f32 1e-08, %v671_v22  ;;  %v1027_v62 = vmul.f32 0.6931472, %v1644_v33 }
 0x29f   :  { %1653 = vlog2.f32 %v677_v30 }
 0x2a0   :  { %v1400_v7 = vpop.f32.mrb[8].mxu1  ;;  %1655 = vlog2.f32 %v672_v63  ;;  %v1646_v2 = vpop.eup %1645 }
 0x2a1   :  { %v681_v8 = vpop.f32.mrb[9].mxu1  ;;  %v687_v60 = vadd.f32 1e-08, %v1400_v7  ;;  %v1648_v3 = vpop.eup %1647  ;;  %v1033_v42 = vmul.f32 0.6931472, %v1646_v2 }
 0x2a2   :  { %v682_v10 = vadd.f32 1e-08, %v681_v8  ;;  %v1031_v51 = vmul.f32 0.6931472, %v1648_v3 }
 0x2a3   :  { %1657 = vlog2.f32 %v687_v60 }
 0x2a4   :  { %v1403_v9 = vpop.f32.mrb[10].mxu1  ;;  %1659 = vlog2.f32 %v682_v10 }
 0x2a5   :  { %v691_v40 = vpop.f32.mrb[11].mxu1  ;;  %v697_v54 = vadd.f32 1e-08, %v1403_v9  ;;  %v1650_v47 = vpop.eup %1649 }
 0x2a6   :  { %v2686_v11 = vpop.f32.mrb[16].mxu0  ;;  %v692_v53 = vadd.f32 1e-08, %v691_v40  ;;  %v1652_v55 = vpop.eup %1651  ;;  %v1037_v59 = vmul.f32 0.6931472, %v1650_v47 }
 0x2a7   :  { %v2688_v20 = vpop.f32.mrb[17].mxu0  ;;  %v1035_v41 = vmul.f32 0.6931472, %v1652_v55 }
 0x2a9   :  { %v1654_v1 = vpop.eup %1653 }
 0x2aa   :  { %v2690_v14 = vpop.f32.mrb[18].mxu0  ;;  %v1656_v5 = vpop.eup %1655 }
 0x2ab   :  { %v2692_v46 = vpop.f32.mrb[19].mxu0  ;;  %v1039_v24 = vmul.f32 0.6931472, %v1656_v5 }
 0x2ae   :  { %v2694_v50 = vpop.f32.mrb[20].mxu0 }
 0x2af   :  { %v2696_v21 = vpop.f32.mrb[21].mxu0 }
 0x2e7   :  { %v2698_v26 = vpop.f32.mrb[22].mxu0 }
 0x2e8   :  { %v2700_v37 = vpop.f32.mrb[23].mxu0 }
 0x2e9   :  { %v1406_v34 = vpop.f32.mrb[12].mxu1 }
 0x2ea   :  { %v701_v4 = vpop.f32.mrb[13].mxu1  ;;  %v707_v31 = vadd.f32 1e-08, %v1406_v34 }
 0x2eb   :  { %v702_v36 = vadd.f32 1e-08, %v701_v4 }
 0x2ed   :  { %v1409_v61 = vpop.f32.mrb[14].mxu1 }
 0x2ee   :  { %v711_v48 = vpop.f32.mrb[15].mxu1  ;;  %v717_v13 = vadd.f32 1e-08, %v1409_v61 }
 0x2ef   :  { %v712_v8 = vadd.f32 1e-08, %v711_v48 }
 0x2f1   :  { %v1444_v43 = vpop.f32.mrb[16].mxu1 }
 0x2f2   :  { %v1059_v6 = vmul.f32 %v1444_v43, %v1029_v23  ;;  %v1091_v32 = vadd.f32 1e-08, %v1444_v43  ;;  %v786_v16 = vpop.f32.mrb[17].mxu1 }
 0x2f3   :  { %v1058_v39 = vmul.f32 %v1027_v62, %v786_v16  ;;  %v1090_v52 = vadd.f32 1e-08, %v786_v16 }
 0x2f4   :  { %v1075_v45 = vsub.f32 %v2686_v11, %v1059_v6  ;;  %1661 = vrcp.f32 %v1091_v32  ;;  %v1658_v11 = vpop.eup %1657 }
 0x2f5   :  { %v1074_v18 = vsub.f32 %v2688_v20, %v1058_v39  ;;  %1663 = vrcp.f32 %v1090_v52  ;;  %v1447_v35 = vpop.f32.mrb[18].mxu1  ;;  %v1045_v33 = vmul.f32 0.6931472, %v1658_v11 }
 0x2f6   :  { %1665 = vlog2.f32 %v697_v54  ;;  %v2704_v58 = vmul.f32 %v1447_v35, %v1033_v42  ;;  %v1093_v44 = vadd.f32 1e-08, %v1447_v35  ;;  %v796_v29 = vpop.f32.mrb[19].mxu1 }
 0x2f7   :  { %1667 = vlog2.f32 %v692_v53  ;;  %v2706_v15 = vmul.f32 %v1031_v51, %v796_v29  ;;  %v1092_v38 = vadd.f32 1e-08, %v796_v29 }
 0x2f8   :  { %v1077_v57 = vsub.f32 %v2690_v14, %v2704_v58  ;;  %1669 = vrcp.f32 %v1093_v44  ;;  %v1041_v14 = vmul.f32 0.6931472, %v1654_v1 }
 0x2f9   :  { %v1076_v0 = vsub.f32 %v2692_v46, %v2706_v15  ;;  %1671 = vrcp.f32 %v1092_v38  ;;  %v1660_v46 = vpop.eup %1659 }
 0x2fa   :  { %v1450_v25 = vpop.f32.mrb[20].mxu1  ;;  %1673 = vlog2.f32 %v707_v31  ;;  %v1043_v2 = vmul.f32 0.6931472, %v1660_v46 }
 0x2fb   :  { %v2712_v12 = vmul.f32 %v1450_v25, %v1037_v59  ;;  %v1095_v22 = vadd.f32 1e-08, %v1450_v25  ;;  %v806_v7 = vpop.f32.mrb[21].mxu1  ;;  %1675 = vlog2.f32 %v702_v36 }
 0x2fc   :  { %v2714_v9 = vmul.f32 %v1035_v41, %v806_v7  ;;  %v1094_v40 = vadd.f32 1e-08, %v806_v7 }
 0x2fd   :  { %v1079_v20 = vsub.f32 %v2694_v50, %v2712_v12  ;;  %1677 = vrcp.f32 %v1095_v22 }
 0x2fe   :  { %v1078_v49 = vsub.f32 %v2696_v21, %v2714_v9  ;;  %1679 = vrcp.f32 %v1094_v40  ;;  %v1662_v27 = vpop.eup %1661 }
 0x2ff   :  { %1681 = vlog2.f32 %v717_v13  ;;  %v1664_v4 = vpop.eup %1663  ;;  %v1109_v30 = vmul.f32 %v1662_v27, %v1075_v45 }
 0x300   :  { %1683 = vlog2.f32 %v712_v8  ;;  %v1666_v19 = vpop.eup %1665  ;;  %v1107_v61 = vmul.f32 %v1664_v4, %v1074_v18 }
 0x301   :  { %v1453_v56 = vpop.f32.mrb[22].mxu1  ;;  %v1668_v60 = vpop.eup %1667  ;;  %v1139_v48 = vsub.f32 0.0, %v1109_v30  ;;  %v1049_v53 = vmul.f32 0.6931472, %v1666_v19 }
 0x302   :  { %v2720_v17 = vmul.f32 %v1453_v56, %v1041_v14  ;;  %v1097_v28 = vadd.f32 1e-08, %v1453_v56  ;;  %v816_v34 = vpop.f32.mrb[23].mxu1  ;;  %v1670_v43 = vpop.eup %1669  ;;  %v1138_v62 = vsub.f32 0.0, %v1107_v61  ;;  %v1047_v47 = vmul.f32 0.6931472, %v1668_v60 }
 0x303   :  { %v1064_v50 = vmul.f32 %v1039_v24, %v816_v34  ;;  %v1096_v63 = vadd.f32 1e-08, %v816_v34  ;;  %v1672_v6 = vpop.eup %1671  ;;  %1156 = vst.msk [vmem:[%s2804_s3 + $0x8] sm:$0xff] %vm1154_vm5, %v1139_v48 }
 0x304   :  { %v1081_v21 = vsub.f32 %v2698_v26, %v2720_v17  ;;  %1685 = vrcp.f32 %v1097_v28  ;;  %v1113_v26 = vmul.f32 %v1670_v43, %v1077_v57  ;;  %v1674_v16 = vpop.eup %1673  ;;  %1155 = vst.msk [vmem:[%s2804_s3] sm:$0xff] %vm1154_vm5, %v1138_v62 }
 0x305   :  { %v1080_v10 = vsub.f32 %v2700_v37, %v1064_v50  ;;  %1687 = vrcp.f32 %v1096_v63  ;;  %v1456_v23 = vpop.f32.mrb[24].mxu1  ;;  %v1111_v37 = vmul.f32 %v1672_v6, %v1076_v0  ;;  %v1676_v39 = vpop.eup %1675  ;;  %v1053_v38 = vmul.f32 0.6931472, %v1674_v16 }
 0x306   :  { %v2725_v3 = vmul.f32 %v1456_v23, %v1045_v33  ;;  %v826_v54 = vpop.f32.mrb[25].mxu1  ;;  %v1141_v52 = vsub.f32 0.0, %v1113_v26  ;;  %v1099_v45 = vadd.f32 1e-08, %v1456_v23  ;;  %v1051_v25 = vmul.f32 0.6931472, %v1676_v39 }
 0x307   :  { %v2731_v32 = vmul.f32 %v1043_v2, %v826_v54  ;;  %v1678_v18 = vpop.eup %1677  ;;  %v1140_v35 = vsub.f32 0.0, %v1111_v37  ;;  %v1098_v51 = vadd.f32 1e-08, %v826_v54 }
 0x308   :  { %v1680_v58 = vpop.eup %1679  ;;  %1158 = vst.msk [vmem:[%s2804_s3 + $0x18] sm:$0xff] %vm1154_vm5, %v1141_v52  ;;  %v1117_v44 = vmul.f32 %v1678_v18, %v1079_v20  ;;  %1689 = vrcp.f32 %v1099_v45 }
 0x309   :  { %v1459_v42 = vpop.f32.mrb[26].mxu1  ;;  %v1682_v36 = vpop.eup %1681  ;;  %1157 = vst.msk [vmem:[%s2804_s3 + $0x10] sm:$0xff] %vm1154_vm5, %v1140_v35  ;;  %v1115_v15 = vmul.f32 %v1680_v58, %v1078_v49  ;;  %1691 = vrcp.f32 %v1098_v51 }
 0x30a   :  { %v2737_v55 = vmul.f32 %v1459_v42, %v1049_v53  ;;  %v836_v31 = vpop.f32.mrb[27].mxu1  ;;  %v1684_v57 = vpop.eup %1683  ;;  %v1143_v59 = vsub.f32 0.0, %v1117_v44  ;;  %v1101_v1 = vadd.f32 1e-08, %v1459_v42  ;;  %v1057_v11 = vmul.f32 0.6931472, %v1682_v36 }
 0x30b   :  { %v2743_v29 = vmul.f32 %v1047_v47, %v836_v31  ;;  %v1142_v5 = vsub.f32 0.0, %v1115_v15  ;;  %v1100_v13 = vadd.f32 1e-08, %v836_v31  ;;  %v1055_v49 = vmul.f32 0.6931472, %v1684_v57 }
 0x30c   :  { %1160 = vst.msk [vmem:[%s2804_s3 + $0x28] sm:$0xff] %vm1154_vm5, %v1143_v59  ;;  %1693 = vrcp.f32 %v1101_v1 }
 0x30d   :  { %v1462_v0 = vpop.f32.mrb[28].mxu1  ;;  %1159 = vst.msk [vmem:[%s2804_s3 + $0x20] sm:$0xff] %vm1154_vm5, %v1142_v5  ;;  %1695 = vrcp.f32 %v1100_v13 }
 0x30e   :  { %v1686_v41 = vpop.eup %1685  ;;  %v1071_v12 = vmul.f32 %v1462_v0, %v1053_v38  ;;  %v846_v22 = vpop.f32.mrb[29].mxu1  ;;  %v1103_v14 = vadd.f32 1e-08, %v1462_v0 }
 0x30f   :  { %v1688_v7 = vpop.eup %1687  ;;  %v1121_v8 = vmul.f32 %v1686_v41, %v1081_v21  ;;  %v1070_v9 = vmul.f32 %v1051_v25, %v846_v22  ;;  %v1102_v24 = vadd.f32 1e-08, %v846_v22 }
 0x310   :  { %v1119_v40 = vmul.f32 %v1688_v7, %v1080_v10  ;;  %1697 = vrcp.f32 %v1103_v14 }
 0x311   :  { %v1145_v20 = vsub.f32 0.0, %v1121_v8  ;;  %1699 = vrcp.f32 %v1102_v24 }
 0x312   :  { %v1465_v46 = vpop.f32.mrb[30].mxu1  ;;  %v1144_v56 = vsub.f32 0.0, %v1119_v40  ;;  %v1690_v19 = vpop.eup %1689 }
 0x313   :  { %v1073_v27 = vmul.f32 %v1465_v46, %v1057_v11  ;;  %v856_v17 = vpop.f32.mrb[31].mxu1  ;;  %1162 = vst.msk [vmem:[%s2804_s3 + $0x38] sm:$0xff] %vm1154_vm5, %v1145_v20  ;;  %v1105_v34 = vadd.f32 1e-08, %v1465_v46  ;;  %v1692_v21 = vpop.eup %1691 }
 0x314   :  { %v1072_v28 = vmul.f32 %v1055_v49, %v856_v17  ;;  %1161 = vst.msk [vmem:[%s2804_s3 + $0x30] sm:$0xff] %vm1154_vm5, %v1144_v56  ;;  %v1104_v30 = vadd.f32 1e-08, %v856_v17 }
 0x315   :  { %1701 = vrcp.f32 %v1105_v34 }
 0x316   :  { %v1512_v4 = vpop.f32.mrb[32].mxu1  ;;  %1703 = vrcp.f32 %v1104_v30  ;;  %v1694_v43 = vpop.eup %1693 }
 0x317   :  { %v1083_v50 = vsub.f32 %v1512_v4, %v2725_v3  ;;  %v987_v63 = vpop.f32.mrb[33].mxu1  ;;  %v1696_v6 = vpop.eup %1695 }
 0x318   :  { %v1082_v61 = vsub.f32 %v987_v63, %v2731_v32 }
 0x319   :  { %v1125_v33 = vmul.f32 %v1690_v19, %v1083_v50 }
 0x31a   :  { %v1123_v60 = vmul.f32 %v1692_v21, %v1082_v61  ;;  %v1515_v48 = vpop.f32.mrb[34].mxu1  ;;  %v1698_v39 = vpop.eup %1697 }
 0x31b   :  { %v1147_v10 = vsub.f32 0.0, %v1125_v33  ;;  %v1085_v23 = vsub.f32 %v1515_v48, %v2737_v55  ;;  %v997_v2 = vpop.f32.mrb[35].mxu1  ;;  %v1700_v42 = vpop.eup %1699 }
 0x31c   :  { %v1146_v62 = vsub.f32 0.0, %v1123_v60  ;;  %v1084_v54 = vsub.f32 %v997_v2, %v2743_v29 }
 0x31d   :  { %1164 = vst.msk [vmem:[%s2804_s3 + $0x48] sm:$0xff] %vm1154_vm5, %v1147_v10  ;;  %v1129_v3 = vmul.f32 %v1694_v43, %v1085_v23 }
 0x31e   :  { %1163 = vst.msk [vmem:[%s2804_s3 + $0x40] sm:$0xff] %vm1154_vm5, %v1146_v62  ;;  %v1127_v26 = vmul.f32 %v1696_v6, %v1084_v54  ;;  %v1518_v32 = vpop.f32.mrb[36].mxu1 }
 0x31f   :  { %v1149_v16 = vsub.f32 0.0, %v1129_v3  ;;  %v1087_v37 = vsub.f32 %v1518_v32, %v1071_v12  ;;  %v1007_v53 = vpop.f32.mrb[37].mxu1  ;;  %v1702_v58 = vpop.eup %1701 }
 0x320   :  { %v1148_v52 = vsub.f32 0.0, %v1127_v26  ;;  %v1086_v45 = vsub.f32 %v1007_v53, %v1070_v9  ;;  %v1704_v36 = vpop.eup %1703 }
 0x321   :  { %1166 = vst.msk [vmem:[%s2804_s3 + $0x58] sm:$0xff] %vm1154_vm5, %v1149_v16  ;;  %v1133_v47 = vmul.f32 %v1698_v39, %v1087_v37 }
 0x322   :  { %1165 = vst.msk [vmem:[%s2804_s3 + $0x50] sm:$0xff] %vm1154_vm5, %v1148_v52  ;;  %v1131_v18 = vmul.f32 %v1700_v42, %v1086_v45  ;;  %v1521_v35 = vpop.f32.mrb[38].mxu1 }
 0x323   :  { %v1151_v51 = vsub.f32 0.0, %v1133_v47  ;;  %v1089_v55 = vsub.f32 %v1521_v35, %v1073_v27  ;;  %v1017_v31 = vpop.f32.mrb[39].mxu1 }
 0x324   :  { %v1150_v44 = vsub.f32 0.0, %v1131_v18  ;;  %v1088_v29 = vsub.f32 %v1017_v31, %v1072_v28 }
 0x325   :  { %1168 = vst.msk [vmem:[%s2804_s3 + $0x68] sm:$0xff] %vm1154_vm5, %v1151_v51  ;;  %v1137_v15 = vmul.f32 %v1702_v58, %v1089_v55 }
 0x326   :  { %1167 = vst.msk [vmem:[%s2804_s3 + $0x60] sm:$0xff] %vm1154_vm5, %v1150_v44  ;;  %v1135_v38 = vmul.f32 %v1704_v36, %v1088_v29 }
 0x327   :  { %v1153_v57 = vsub.f32 0.0, %v1137_v15 }
 0x328   :  { %v1152_v59 = vsub.f32 0.0, %v1135_v38 }
 0x329   :  { %1170 = vst.msk [vmem:[%s2804_s3 + $0x78] sm:$0xff] %vm1154_vm5, %v1153_v57 }
 0x32a   :  { %1169 = vst.msk [vmem:[%s2804_s3 + $0x70] sm:$0xff] %vm1154_vm5, %v1152_v59 }

</bundles_post_ra>
